<compile_context>
chip_gen: v7x
topology: tpu7x:2x2x1
jax: 0.10.0
libtpu: 0.0.40
codegen_flags: <defaults>
</compile_context>

<pallas_src>
import functools

import jax
import jax.numpy as jnp
from jax.experimental import pallas as pl
from jax.experimental.pallas import tpu as pltpu


def encoder_kernel(x_ref, w_ref, b_ref, o_ref):
    # f32 x tile streamed from HBM; cast to bf16 on the VPU under the DMA so
    # the MXU gets its fast bf16 path while accumulating in f32.
    x_bf16 = x_ref[...].astype(jnp.bfloat16)
    h = jnp.dot(x_bf16, w_ref[...], preferred_element_type=jnp.float32)
    h = h + b_ref[...]                                   # f32 bias add (VPU)
    # Sigmoid: clamp so exp never overflows; exp on the EUP, approximate
    # reciprocal also on the EUP -> epilogue stays off the VALU.
    h = jnp.clip(h, -30.0, 30.0)
    e = jnp.exp(-h)
    o_ref[...] = pl.reciprocal(1.0 + e, approx=True).astype(o_ref.dtype)


def _vmem_capacity_bytes():
    """Per-generation VMEM capacity (conservative fallback = v7x 64 MiB)."""
    try:
        return int(pltpu.get_tpu_info().vmem_capacity_bytes)
    except Exception:
        return 64 << 20


def _pick_batch_tile(B, D, latent_pad, x_itemsize=4, out_itemsize=4):
    """Largest batch tile fitting the VMEM budget of the current generation.

    Budget = double-buffered x tile + double-buffered out tile + the
    single-buffered resident bf16 W^T and bias, with ~30% headroom for
    compiler scratch.
    """
    budget = int(_vmem_capacity_bytes() * 0.7)
    resident = D * latent_pad * 2 + 8 * latent_pad * 4   # bf16 W^T + f32 bias row

    def fits(tb):
        stream = 2 * tb * D * x_itemsize + 2 * tb * latent_pad * out_itemsize
        return resident + stream <= budget

    # Whole problem in one grid step: no per-step (~0.35us) overhead, no
    # pipelining needed for tiny batches.
    if fits(B):
        return B
    # Otherwise the largest multiple-of-16 tile (fully packed bf16 sublanes)
    # that fits.  TODO(synk): on v7x prefer a tb giving an even n_tiles so the
    # two TensorCores get balanced work.
    for tb in (4096, 2048, 1024, 512, 256, 128, 64, 32, 16):
        if tb < B and fits(tb):
            return tb
    return 16


def prepare_encoder_params(params, compute_dtype=jnp.bfloat16):
    """Call-once parameter prep (transpose/cast/pad hoisted out of forward).

    PyTorch nn.Linear convention w:(latent, in), b:(latent,) is converted to
    W^T:(in, latent_pad) bf16 and bias:(1, latent_pad) f32, with latent padded
    to a lane-dense multiple of 128 by zero columns.
    """
    w = jnp.asarray(params["w"], jnp.float32)
    b = jnp.asarray(params["b"], jnp.float32)
    latent, _ = w.shape
    latent_pad = max(128, ((latent + 127) // 128) * 128)
    w_t = w.T.astype(compute_dtype)                       # (in_size, latent)
    if latent_pad != latent:
        w_t = jnp.pad(w_t, ((0, 0), (0, latent_pad - latent)))
        b = jnp.pad(b, (0, latent_pad - latent))
    return {
        "w_t": w_t,                                        # (in_size, latent_pad) bf16
        "b_row": b.reshape(1, latent_pad).astype(jnp.float32),
        "latent": int(latent),                             # static, passed separately
    }


@functools.partial(jax.jit, static_argnames=("latent", "batch_tile", "out_dtype"))
def encoder_forward(x, w_t, b_row, *, latent, batch_tile=None,
                    out_dtype=jnp.float32):
    """Fused Linear + Sigmoid encoder.

    x:     (B, in_size) float32 (cast to bf16 inside the kernel)
    w_t:   (in_size, latent_pad) bf16   (from prepare_encoder_params)
    b_row: (1, latent_pad) float32
    """
    B, D = x.shape
    D_w, latent_pad = w_t.shape
    assert D_w == D, (D_w, D)

    out_itemsize = jnp.dtype(out_dtype).itemsize
    tb = batch_tile if batch_tile is not None else _pick_batch_tile(
        B, D, latent_pad, x.dtype.itemsize, out_itemsize)
    tb = min(tb, B)
    n_tiles = pl.cdiv(B, tb)   # partial last block is masked by Pallas (no jnp.pad)

    cost = pl.CostEstimate(
        flops=2 * B * D * latent_pad,
        transcendentals=B * latent_pad,
        bytes_accessed=(B * D * x.dtype.itemsize
                        + w_t.size * w_t.dtype.itemsize
                        + b_row.size * 4
                        + B * latent_pad * out_itemsize),
    )

    out = pl.pallas_call(
        encoder_kernel,
        out_shape=jax.ShapeDtypeStruct((B, latent_pad), out_dtype),
        grid_spec=pltpu.PrefetchScalarGridSpec(
            num_scalar_prefetch=0,
            grid=(n_tiles,),
            in_specs=[
                # streamed x tile: default double-buffering
                pl.BlockSpec((tb, D), lambda i: (i, 0)),
                # block-invariant operands: single buffer (saves VMEM)
                pl.BlockSpec((D, latent_pad), lambda i: (0, 0),
                             pipeline_mode=pl.Buffered(1)),
                pl.BlockSpec((1, latent_pad), lambda i: (0, 0),
                             pipeline_mode=pl.Buffered(1)),
            ],
            out_specs=pl.BlockSpec((tb, latent_pad), lambda i: (i, 0)),
        ),
        compiler_params=pltpu.CompilerParams(
            dimension_semantics=("parallel",),
            # Raise v5e's 16 MiB scoped default; stay under v7x's 64 MiB physical.
            vmem_limit_bytes=int(min(_vmem_capacity_bytes() * 0.9, 128 << 20)),
        ),
        cost_estimate=cost,
    )(x, w_t, b_row)
    # Drop the lane-padding columns (latent was padded to a multiple of 128).
    return out[:, :latent]


def init_encoder_params(key, in_size, latent_size):
    """Deterministic synthetic parameters with PyTorch nn.Linear shapes."""
    k_w, k_b = jax.random.split(key)
    lim = 1.0 / jnp.sqrt(jnp.float32(in_size))
    return {
        "w": jax.random.uniform(k_w, (latent_size, in_size), jnp.float32, -lim, lim),
        "b": jax.random.uniform(k_b, (latent_size,), jnp.float32, -lim, lim),
    }


def encoder_reference(x, params):
    """Pure-JAX f32 reference mirroring the PyTorch forward."""
    return jax.nn.sigmoid(x @ params["w"].T + params["b"])


if __name__ == "__main__":
    key = jax.random.PRNGKey(0)
    kx, kp = jax.random.split(key)

    batch = 64
    in_size = 128
    latent_size = 32

    x = jax.random.normal(kx, (batch, in_size), jnp.float32)
    params = init_encoder_params(kp, in_size, latent_size)
    prepared = prepare_encoder_params(params)   # hoisted: transpose/cast/pad once

    out = encoder_forward(x, prepared["w_t"], prepared["b_row"],
                          latent=prepared["latent"])
    out = jax.block_until_ready(out)

    ref = encoder_reference(x, params)
    assert out.shape == (batch, latent_size), out.shape
    # bf16 MXU operands (f32 accumulation) + approx reciprocal: relaxed tolerance
    # (intentional accuracy/perf tradeoff vs the exact f32 sigmoid).
    assert jnp.allclose(out, ref, atol=2e-2, rtol=2e-2), "mismatch vs reference"

    print("KERNEL_OK")
</pallas_src>

<mosaic_0001>
module attributes {stable_mosaic.version = 11 : i64} {
  func.func @encoder_kernel(%arg0: i32, %arg1: memref<64x128xf32, #tpu.memory_space<vmem>>, %arg2: memref<128x128xbf16, #tpu.memory_space<vmem>>, %arg3: memref<1x128xf32, #tpu.memory_space<vmem>>, %arg4: memref<64x128xf32, #tpu.memory_space<vmem>>) attributes {dimension_semantics = [#tpu.dimension_semantics<parallel>], iteration_bounds = array<i64: 1>, scalar_prefetch = 0 : i64, scratch_operands = 0 : i64, tpu.core_type = #tpu.core_type<tc>, window_params = [{transform_indices = @transform_0, window_bounds = array<i64: 64, 128>}, {pipeline_mode = #tpu.pipeline_mode<synchronous>, transform_indices = @transform_1, window_bounds = array<i64: 128, 128>}, {pipeline_mode = #tpu.pipeline_mode<synchronous>, transform_indices = @transform_2, window_bounds = array<i64: 1, 128>}, {transform_indices = @transform_3, window_bounds = array<i64: 64, 128>}]} {
    %c0 = arith.constant 0 : index
    %c0_0 = arith.constant 0 : index
    %0 = vector.load %arg1[%c0, %c0_0] : memref<64x128xf32, #tpu.memory_space<vmem>>, vector<64x128xf32>
    %1 = arith.truncf %0 : vector<64x128xf32> to vector<64x128xbf16>
    %c0_1 = arith.constant 0 : index
    %c0_2 = arith.constant 0 : index
    %2 = vector.load %arg2[%c0_1, %c0_2] : memref<128x128xbf16, #tpu.memory_space<vmem>>, vector<128x128xbf16>
    %cst = arith.constant dense<0.000000e+00> : vector<64x128xf32>
    %3 = tpu.matmul %1, %2, %cst {dimension_numbers = #tpu.dot_dimension_numbers<[1], [0], [0], [1], [0, 0, 1, 1], [], []>} : vector<64x128xbf16>, vector<128x128xbf16>, vector<64x128xf32> -> vector<64x128xf32>
    %c0_3 = arith.constant 0 : index
    %c0_4 = arith.constant 0 : index
    %4 = vector.load %arg3[%c0_3, %c0_4] : memref<1x128xf32, #tpu.memory_space<vmem>>, vector<1x128xf32>
    %5 = vector.broadcast %4 : vector<1x128xf32> to vector<64x128xf32>
    %6 = arith.addf %3, %5 : vector<64x128xf32>
    %cst_5 = arith.constant -3.000000e+01 : f32
    %cst_6 = arith.constant 3.000000e+01 : f32
    %7 = vector.broadcast %cst_5 : f32 to vector<64x128xf32>
    %8 = arith.maximumf %7, %6 : vector<64x128xf32>
    %9 = vector.broadcast %cst_6 : f32 to vector<64x128xf32>
    %10 = arith.minimumf %9, %8 : vector<64x128xf32>
    %cst_7 = arith.constant 0.000000e+00 : f32
    %11 = vector.broadcast %cst_7 : f32 to vector<64x128xf32>
    %12 = arith.subf %11, %10 : vector<64x128xf32>
    %13 = math.exp %12 : vector<64x128xf32>
    %cst_8 = arith.constant 1.000000e+00 : f32
    %14 = vector.broadcast %cst_8 : f32 to vector<64x128xf32>
    %15 = arith.addf %14, %13 : vector<64x128xf32>
    %16 = tpu.reciprocal %15 {approx = true} : vector<64x128xf32> -> vector<64x128xf32>
    %c0_9 = arith.constant 0 : index
    %c0_10 = arith.constant 0 : index
    %17 = vector.load %arg4[%c0_9, %c0_10] : memref<64x128xf32, #tpu.memory_space<vmem>>, vector<64x128xf32>
    tpu.vector_store %arg4[%c0_9, %c0_10], %16 {strides = array<i32>} : memref<64x128xf32, #tpu.memory_space<vmem>>, vector<64x128xf32>,
    return
  }
  func.func @transform_0(%arg0: i32) -> (i32, i32) {
    %c0_i32 = arith.constant 0 : i32
    %c0_i32_0 = arith.constant 0 : i32
    return %arg0, %c0_i32 : i32, i32
  }
  func.func @transform_1(%arg0: i32) -> (i32, i32) {
    %c0_i32 = arith.constant 0 : i32
    %c0_i32_0 = arith.constant 0 : i32
    %c0_i32_1 = arith.constant 0 : i32
    return %c0_i32, %c0_i32_0 : i32, i32
  }
  func.func @transform_2(%arg0: i32) -> (i32, i32) {
    %c0_i32 = arith.constant 0 : i32
    %c0_i32_0 = arith.constant 0 : i32
    %c0_i32_1 = arith.constant 0 : i32
    return %c0_i32, %c0_i32_0 : i32, i32
  }
  func.func @transform_3(%arg0: i32) -> (i32, i32) {
    %c0_i32 = arith.constant 0 : i32
    %c0_i32_0 = arith.constant 0 : i32
    return %arg0, %c0_i32 : i32, i32
  }
}

</mosaic_0001>

<bundles_post_ra>
// kernel: encoder_forward.1
= control target key start
LH: loop header
LB: loop body
LE: loop exit
PB: predicated region body
PF: predicated region fallthrough
CT: control target
= control target key end

     0   :  { %8 = vsyncpa [#allocation3], 0  ;;  %s501_s0 = inlined_call_operand.hbm [shape: f32[64,128], index: 0, kind: input, shape index: {}]   ;;  %s502_s1 = inlined_call_operand.hbm [shape: bf16[128,128], index: 1, kind: input, shape index: {}]   ;;  %s503_s2 = inlined_call_operand.vmem [shape: f32[1,128], index: 2, kind: input, shape index: {}]   ;;  %s504_s3 = inlined_call_operand.vmem [shape: f32[64,128], index: 3, kind: output, shape index: {}]  }
   0x1   :  { %9 = vsyncpa [#allocation5], 0  ;;  %s424_s12 = smov [#allocation2]   ;;  %s376_s16 = scalar_lea.hbm %s501_s0, 1024 }
   0x2   :  { %s15_s13 = sshll.u32 %s424_s12, 4  ;;  %p377_p0 = scmp.ne.s32.totalorder %s501_s0, %s376_s16  ;;  %s16_s13 = int_to_ptr.vmem [resolvable:$true] %s15_s13 }
   0x3   :  { %p380_p1 = scmp.lt.u32.totalorder %s376_s16, %s501_s0 }
   0x5   :  { %p382_p2 = pnand %p380_p1, %p377_p0 }
   0x7   :  { %385 = shalt.err (!%p382_p2)
}
   0x8   :  { %s386_s21 = scalar_lea.vmem %s16_s13, 1024  ;;  %p391_p4 = scmp.lt.s32.totalorder %s16_s13, %s16_s13 }
   0x9   :  { %p387_p3 = scmp.ne.s32.totalorder %s16_s13, %s386_s21  ;;  %p392_p5 = scmp.lt.s32.totalorder %s386_s21, %s386_s21 }
   0xb   :  { %p393_p6 = por %p392_p5, %p391_p4 }
   0xd   :  { %p394_p7 = pnand %p393_p6, %p387_p3 }
   0xf   :  { %397 = shalt.err (!%p394_p7)
}
  0x10   :  { %s425_s22 = smov 128   ;;  %s426_s23 = smov 8  }
  0x11   :  { %21 = dma.hbm_to_vmem [thread:$0]  %s501_s0, 1024, %s16_s13, [#allocation3], %s425_s22, %s425_s22, %s426_s23  }
  0x12   :  { %s427_s26 = smov [#allocation4]   ;;  %s398_s30 = scalar_lea.hbm %s502_s1, 1024 }
  0x13   :  { %s27_s27 = sshll.u32 %s427_s26, 4  ;;  %p399_p8 = scmp.ne.s32.totalorder %s502_s1, %s398_s30  ;;  %s28_s27 = int_to_ptr.vmem [resolvable:$true] %s27_s27 }
  0x14   :  { %p402_p9 = scmp.lt.u32.totalorder %s398_s30, %s502_s1 }
  0x16   :  { %p404_p10 = pnand %p402_p9, %p399_p8 }
  0x18   :  { %407 = shalt.err (!%p404_p10)
}
  0x19   :  { %s408_s8 = scalar_lea.vmem %s28_s27, 1024  ;;  %p413_p12 = scmp.lt.s32.totalorder %s28_s27, %s28_s27 }
  0x1a   :  { %p409_p11 = scmp.ne.s32.totalorder %s28_s27, %s408_s8  ;;  %p414_p13 = scmp.lt.s32.totalorder %s408_s8, %s408_s8 }
  0x1c   :  { %p415_p0 = por %p414_p13, %p413_p12 }
  0x1e   :  { %p416_p1 = pnand %p415_p0, %p409_p11 }
  0x20   :  { %419 = shalt.err (!%p416_p1)
}
  0x21   :  { %s428_s0 = smov 64   ;;  %s429_s9 = smov 4  }
  0x22   :  { %33 = dma.hbm_to_vmem [thread:$0]  %s502_s1, 1024, %s28_s27, [#allocation5], %s428_s0, %s428_s0, %s429_s9  }
  0x23   :  { %420 = dma.done.wait [#allocation3], 1024  }
  0x24   :  { %421 = vsyncadd [#allocation3], 4294966272 }
  0x25   :  { %422 = dma.done.wait [#allocation5], 1024  }
  0x26   :  { %423 = vsyncadd [#allocation5], 4294966272  ;;  %v336_v0 = vld [vmem:[#allocation4] sm:$0xff]   ;;  %v337_v1 = vld [vmem:[#allocation4 + $0x8] sm:$0xff]  }
  0x27   :  { %290 = vmatprep.subr.bf16.mxu0 %v336_v0  ;;  %314 = vmatprep.subr.bf16.mxu1 %v336_v0  ;;  %v338_v2 = vld [vmem:[#allocation4 + $0x10] sm:$0xff]   ;;  %v339_v3 = vld [vmem:[#allocation4 + $0x18] sm:$0xff]   ;;  %v43_v4 = vld [vmem:[#allocation2] sm:$0xff] }
  0x28   :  { %291 = vmatpush3.bf16.msra.mxu0 %v336_v0  ;;  %322 = vmatpush3.bf16.msra.mxu1 %v336_v0  ;;  %v44_v5 = vld [vmem:[#allocation2 + $0x8] sm:$0xff]  ;;  %v47_v6 = vld [vmem:[#allocation2 + $0x20] sm:$0xff]  ;;  %v342_v12 = vld [vmem:[#allocation4 + $0x30] sm:$0xff]  }
  0x29   :  { %292 = vmatprep.subr.bf16.mxu0 %v337_v1  ;;  %315 = vmatprep.subr.bf16.mxu1 %v337_v1  ;;  %v51_v7 = vpack.c.bf16 %v44_v5, %v43_v4  ;;  %v48_v8 = vld [vmem:[#allocation2 + $0x28] sm:$0xff]  ;;  %v340_v10 = vld [vmem:[#allocation4 + $0x20] sm:$0xff]   ;;  %v343_v13 = vld [vmem:[#allocation4 + $0x38] sm:$0xff]  }
  0x2a   :  { %v53_v9 = vpack.c.bf16 %v48_v8, %v47_v6  ;;  %v341_v11 = vld [vmem:[#allocation4 + $0x28] sm:$0xff]   ;;  %v45_v14 = vld [vmem:[#allocation2 + $0x10] sm:$0xff]  ;;  %v46_v15 = vld [vmem:[#allocation2 + $0x18] sm:$0xff] }
  0x2b   :  { %306 = vmatprep.mubr.bf16.mxu0 %v51_v7  ;;  %v49_v16 = vld [vmem:[#allocation2 + $0x30] sm:$0xff]  ;;  %v50_v17 = vld [vmem:[#allocation2 + $0x38] sm:$0xff]  ;;  %v52_v18 = vpack.c.bf16 %v46_v15, %v45_v14  ;;  %v261_v20 = vld [vmem:[%s503_s2] ss:$0 sm:$0xff] }
  0x2c   :  { %293 = vmatpush3.bf16.msra.mxu0 %v337_v1  ;;  %323 = vmatpush3.bf16.msra.mxu1 %v337_v1  ;;  %v54_v19 = vpack.c.bf16 %v50_v17, %v49_v16 }
  0x2d   :  { %294 = vmatprep.subr.bf16.mxu0 %v338_v2  ;;  %316 = vmatprep.subr.bf16.mxu1 %v338_v2 }
  0x2e   :  { %310 = vmatprep.mubr.bf16.mxu1 %v53_v9 }
  0x30   :  { %295 = vmatpush3.bf16.msra.mxu0 %v338_v2  ;;  %324 = vmatpush3.bf16.msra.mxu1 %v338_v2 }
  0x31   :  { %296 = vmatprep.subr.bf16.mxu0 %v339_v3  ;;  %317 = vmatprep.subr.bf16.mxu1 %v339_v3 }
  0x34   :  { %297 = vmatpush3.bf16.msra.mxu0 %v339_v3  ;;  %325 = vmatpush3.bf16.msra.mxu1 %v339_v3 }
  0x35   :  { %298 = vmatprep.subr.bf16.mxu0 %v340_v10  ;;  %318 = vmatprep.subr.bf16.mxu1 %v340_v10 }
  0x38   :  { %299 = vmatpush3.bf16.msra.mxu0 %v340_v10  ;;  %326 = vmatpush3.bf16.msra.mxu1 %v340_v10 }
  0x39   :  { %300 = vmatprep.subr.bf16.mxu0 %v341_v11  ;;  %319 = vmatprep.subr.bf16.mxu1 %v341_v11 }
  0x3c   :  { %301 = vmatpush3.bf16.msra.mxu0 %v341_v11  ;;  %327 = vmatpush3.bf16.msra.mxu1 %v341_v11 }
  0x3d   :  { %302 = vmatprep.subr.bf16.mxu0 %v342_v12  ;;  %320 = vmatprep.subr.bf16.mxu1 %v342_v12 }
  0x40   :  { %303 = vmatpush3.bf16.msra.mxu0 %v342_v12  ;;  %328 = vmatpush3.bf16.msra.mxu1 %v342_v12 }
  0x41   :  { %304 = vmatprep.subr.bf16.mxu0 %v343_v13  ;;  %321 = vmatprep.subr.bf16.mxu1 %v343_v13 }
  0x44   :  { %305 = vmatpush3.bf16.msra.mxu0 %v343_v13  ;;  %329 = vmatpush3.bf16.msra.mxu1 %v343_v13 }
  0x47   :  { %307 = vmatmul.mubr.bf16.vlgmr.msra.gmra.mrb[0].mxu0 %v52_v18  ;;  %311 = vmatmul.mubr.bf16.vlgmr.msra.gmra.mrb[0].mxu1 %v54_v19 }
 0x11a   :  { %v308_v21 = vpop.f32.mrb[0].mxu0  ;;  %v312_v22 = vpop.f32.mrb[0].mxu1 }
 0x11b   :  { %v169_v23 = vadd.f32 %v308_v21, %v261_v20  ;;  %v185_v24 = vadd.f32 %v312_v22, %v261_v20  ;;  %v160_v25 = vpop.f32.mrb[1].mxu0  ;;  %v176_v26 = vpop.f32.mrb[1].mxu1 }
 0x11c   :  { %v161_v27 = vadd.f32 %v261_v20, %v160_v25  ;;  %v177_v28 = vadd.f32 %v261_v20, %v176_v26  ;;  %v309_v29 = vpop.f32.mrb[2].mxu0  ;;  %v313_v30 = vpop.f32.mrb[2].mxu1 }
 0x11d   :  { %v272_v31 = vclamps-f32 %v169_v23, 30.0  ;;  %v276_v32 = vclamps-f32 %v185_v24, 30.0  ;;  %v172_v33 = vadd.f32 %v309_v29, %v261_v20  ;;  %v188_v34 = vadd.f32 %v313_v30, %v261_v20  ;;  %v163_v35 = vpop.f32.mrb[3].mxu0  ;;  %v179_v36 = vpop.f32.mrb[3].mxu1 }
 0x11e   :  { %v270_v37 = vclamps-f32 %v161_v27, 30.0  ;;  %v274_v38 = vclamps-f32 %v177_v28, 30.0  ;;  %v164_v39 = vadd.f32 %v261_v20, %v163_v35  ;;  %v180_v40 = vadd.f32 %v261_v20, %v179_v36 }
 0x11f   :  { %v209_v41 = vsub.f32 0.0, %v272_v31  ;;  %v213_v42 = vsub.f32 0.0, %v276_v32  ;;  %v273_v43 = vclamps-f32 %v172_v33, 30.0  ;;  %v277_v44 = vclamps-f32 %v188_v34, 30.0 }
 0x120   :  { %v207_v45 = vsub.f32 0.0, %v270_v37  ;;  %v211_v46 = vsub.f32 0.0, %v274_v38  ;;  %v271_v47 = vclamps-f32 %v164_v39, 30.0  ;;  %v275_v48 = vclamps-f32 %v180_v40, 30.0 }
 0x121   :  { %v219_v49 = vmul.f32 1.442695, %v209_v41  ;;  %v227_v50 = vmul.f32 1.442695, %v213_v42  ;;  %v210_v51 = vsub.f32 0.0, %v273_v43  ;;  %v214_v52 = vsub.f32 0.0, %v277_v44 }
 0x122   :  { %v215_v53 = vmul.f32 1.442695, %v207_v45  ;;  %v223_v54 = vmul.f32 1.442695, %v211_v46  ;;  %v208_v55 = vsub.f32 0.0, %v271_v47  ;;  %v212_v56 = vsub.f32 0.0, %v275_v48 }
 0x123   :  { %344 = vpow2.f32 %v219_v49  ;;  %v221_v57 = vmul.f32 1.442695, %v210_v51  ;;  %v229_v58 = vmul.f32 1.442695, %v214_v52 }
 0x124   :  { %346 = vpow2.f32 %v227_v50  ;;  %v217_v59 = vmul.f32 1.442695, %v208_v55  ;;  %v225_v60 = vmul.f32 1.442695, %v212_v56 }
 0x125   :  { %348 = vpow2.f32 %v215_v53 }
 0x126   :  { %350 = vpow2.f32 %v223_v54 }
 0x127   :  { %352 = vpow2.f32 %v221_v57 }
 0x128   :  { %354 = vpow2.f32 %v229_v58 }
 0x129   :  { %356 = vpow2.f32 %v217_v59 }
 0x12a   :  { %358 = vpow2.f32 %v225_v60 }
 0x12d   :  { %v345_v61 = vpop.eup %344 }
 0x12e   :  { %v347_v62 = vpop.eup %346  ;;  %v233_v63 = vadd.f32 1.0, %v345_v61 }
 0x12f   :  { %v349_v0 = vpop.eup %348  ;;  %v237_v1 = vadd.f32 1.0, %v347_v62 }
 0x130   :  { %v351_v2 = vpop.eup %350  ;;  %360 = vrcp.f32 %v233_v63  ;;  %v231_v3 = vadd.f32 1.0, %v349_v0 }
 0x131   :  { %v353_v4 = vpop.eup %352  ;;  %362 = vrcp.f32 %v237_v1  ;;  %v235_v5 = vadd.f32 1.0, %v351_v2 }
 0x132   :  { %v355_v6 = vpop.eup %354  ;;  %364 = vrcp.f32 %v231_v3  ;;  %v234_v7 = vadd.f32 1.0, %v353_v4 }
 0x133   :  { %v357_v8 = vpop.eup %356  ;;  %366 = vrcp.f32 %v235_v5  ;;  %v238_v9 = vadd.f32 1.0, %v355_v6 }
 0x134   :  { %v359_v10 = vpop.eup %358  ;;  %368 = vrcp.f32 %v234_v7  ;;  %v232_v11 = vadd.f32 1.0, %v357_v8 }
 0x135   :  { %370 = vrcp.f32 %v238_v9  ;;  %v236_v12 = vadd.f32 1.0, %v359_v10 }
 0x136   :  { %372 = vrcp.f32 %v232_v11 }
 0x137   :  { %374 = vrcp.f32 %v236_v12 }
 0x13a   :  { %v361_v13 = vpop.eup %360 }
 0x13b   :  { %v363_v14 = vpop.eup %362  ;;  %249 = vst [vmem:[%s504_s3 + $0x10] sm:$0xff] %v361_v13 }
 0x13c   :  { %v365_v15 = vpop.eup %364  ;;  %253 = vst [vmem:[%s504_s3 + $0x30] sm:$0xff] %v363_v14 }
 0x13d   :  { %v367_v16 = vpop.eup %366  ;;  %247 = vst [vmem:[%s504_s3] sm:$0xff] %v365_v15 }
 0x13e   :  { %v369_v17 = vpop.eup %368  ;;  %251 = vst [vmem:[%s504_s3 + $0x20] sm:$0xff] %v367_v16 }
 0x13f   :  { %v371_v18 = vpop.eup %370  ;;  %250 = vst [vmem:[%s504_s3 + $0x18] sm:$0xff] %v369_v17 }
 0x140   :  { %v373_v19 = vpop.eup %372  ;;  %254 = vst [vmem:[%s504_s3 + $0x38] sm:$0xff] %v371_v18 }
 0x141   :  { %v375_v20 = vpop.eup %374  ;;  %248 = vst [vmem:[%s504_s3 + $0x8] sm:$0xff] %v373_v19 }
 0x142   :  { %252 = vst [vmem:[%s504_s3 + $0x28] sm:$0xff] %v375_v20 }
 0x143   :  { %259 = vsyncpa [#allocation3], 1 }
 0x144   :  { %260 = vsyncpa [#allocation5], 1 }

</bundles_post_ra>
